<compile_context>
chip_gen: v7x
topology: tpu7x:2x2x1
jax: 0.10.0
libtpu: 0.0.40
codegen_flags: <defaults>
</compile_context>

<pallas_src>
import functools

import jax
import jax.numpy as jnp
from jax import lax
from jax.experimental import pallas as pl
from jax.experimental.pallas import tpu as pltpu


def _ls_ce_kernel(x_ref, tgt_ref, loss_ref, *, smoothing: float):
    """One tile of rows: label-smoothed cross entropy, fused weighted reduction.

    loss = conf*(LSE - x[tgt]) + smooth*(LSE - mean(x))
         = LSE - sum_c( x[c] * w[c] ),   w[c] = conf + smooth/C  if c == tgt
                                                 smooth/C        otherwise
    (uses conf + smooth == 1).
    """
    confidence = 1.0 - smoothing

    xb = x_ref[...]                                      # (tile_n, C), native dtype
    tile_n, C = xb.shape
    w_tgt = jnp.float32(confidence + smoothing / C)
    w_oth = jnp.float32(smoothing / C)

    # Row-wise max in the native dtype (exact; bf16 VALU on v6e/v7x).
    m = jnp.max(xb, axis=-1, keepdims=True)              # (tile_n, 1)

    # Per-class weights via lane iota compare against the target column.
    tgt = tgt_ref[...]                                    # (tile_n, 1) int32
    class_ids = lax.broadcasted_iota(jnp.int32, (tile_n, C), 1)
    w = jnp.where(class_ids == tgt, w_tgt, w_oth)         # (tile_n, C) f32

    # Fused weighted reduction: conf*x[tgt] + (smooth/C)*sum(x), accumulated
    # in f32 (the upcast is fused per-vreg into the reduce, no persistent copy).
    xf = xb.astype(jnp.float32)
    wsum = jnp.sum(w * xf, axis=-1, keepdims=True)        # (tile_n, 1)

    # Numerically stable logsumexp; exp kept in f32 for accuracy.
    # NOTE: ragged-N edge blocks have padded rows with unspecified data; the
    # computation is strictly row-independent and padded rows are dropped on
    # writeback -- do NOT introduce any cross-row reduction in this kernel.
    mf = m.astype(jnp.float32)
    lse = mf + jnp.log(jnp.sum(jnp.exp(xf - mf), axis=-1, keepdims=True))

    loss_ref[...] = (lse - wsum).astype(loss_ref.dtype)


def _vmem_limit_bytes(default: int = 48 << 20) -> int:
    """Scoped-VMEM limit: ~3/4 of physical VMEM, capped at 64 MiB, >= 32 MiB."""
    try:
        cap = int(pltpu.get_tpu_info().vmem_capacity_bytes)
    except Exception:
        return default
    lim = min(cap * 3 // 4, 64 << 20)
    return max(lim, 32 << 20)


def _choose_tile_n(N: int, C: int, itemsize: int) -> int:
    """Pick the row-tile size.

    Targets ~2 MiB of input per tile (roofline is flat past ~512-row tiles and
    the f32 temporaries inside the kernel are ~3-4x the bf16 input bytes, so
    this keeps double-buffered input + temporaries well inside v7x's 48 MiB
    scoped VMEM), rounds to the sublane packing of the input dtype, and keeps
    the grid length EVEN whenever N allows so both v7x TensorCores get
    balanced work.
    """
    sub = {4: 8, 2: 16, 1: 32}.get(itemsize, 8)            # sublane packing
    row_bytes = max(C * itemsize, 1)
    target_tile_bytes = 2 << 20                            # ~2 MiB input tile
    t = (target_tile_bytes // row_bytes) // sub * sub
    t = max(sub, min(t, 512))
    n_up = -(-N // sub) * sub                              # N rounded up to sub
    t = min(t, n_up)
    steps = -(-n_up // t)
    if steps % 2 == 1 and n_up > sub:
        # Odd grid length: split into the next even step count (v7x megacore).
        new_steps = steps + 1
        t2 = -(-(-(-n_up // new_steps)) // sub) * sub
        t = max(sub, min(t, t2))
    return t


def label_smoothing_cross_entropy(x, target, smoothing: float = 0.1,
                                  tile_n: int | None = None):
    """x: (N, C) float (f32 or bf16), target: (N,) int. Returns (N,) f32."""
    assert smoothing < 1.0
    N, C = x.shape
    itemsize = jnp.dtype(x.dtype).itemsize
    if tile_n is None:
        tile_n = _choose_tile_n(N, C, itemsize)

    target2d = target.astype(jnp.int32).reshape(N, 1)
    kernel = functools.partial(_ls_ce_kernel, smoothing=float(smoothing))

    cost = pl.CostEstimate(
        flops=int(5 * N * C),
        transcendentals=int(N * C),
        bytes_accessed=int(N * C * itemsize + N * 4 + N * 4),
    )

    loss2d = pl.pallas_call(
        kernel,
        out_shape=jax.ShapeDtypeStruct((N, 1), jnp.float32),
        grid_spec=pltpu.PrefetchScalarGridSpec(
            num_scalar_prefetch=0,
            grid=(pl.cdiv(N, tile_n),),
            in_specs=[
                pl.BlockSpec((tile_n, C), lambda i: (i, 0)),
                pl.BlockSpec((tile_n, 1), lambda i: (i, 0)),
            ],
            out_specs=pl.BlockSpec((tile_n, 1), lambda i: (i, 0)),
        ),
        compiler_params=pltpu.CompilerParams(
            dimension_semantics=("parallel",),
            vmem_limit_bytes=_vmem_limit_bytes(),
        ),
        cost_estimate=cost,
    )(x, target2d)

    return loss2d.reshape(N)


def _reference(x, target, smoothing=0.1):
    confidence = 1.0 - smoothing
    logprobs = jax.nn.log_softmax(x.astype(jnp.float32), axis=-1)
    nll = -jnp.take_along_axis(logprobs, target[:, None], axis=-1)[:, 0]
    smooth = -jnp.mean(logprobs, axis=-1)
    return confidence * nll + smoothing * smooth


if __name__ == "__main__":
    key = jax.random.PRNGKey(0)
    kx, kt = jax.random.split(key)

    # Small demo shape consistent with the module: (N, C) logits + (N,) targets.
    N, C = 16, 32
    x = jax.random.normal(kx, (N, C), dtype=jnp.float32)
    target = jax.random.randint(kt, (N,), 0, C, dtype=jnp.int32)

    loss = jax.block_until_ready(
        label_smoothing_cross_entropy(x, target, smoothing=0.1))
    ref = _reference(x, target, smoothing=0.1)
    assert loss.shape == (N,)
    assert jnp.allclose(loss, ref, atol=1e-5, rtol=1e-5), (loss, ref)

    # Ragged N (not a multiple of the tile) + bf16 logits (halved HBM reads;
    # compare/select/max stay bf16 in-kernel, exp/accumulate upcast to f32).
    N2, C2 = 20, 32
    x2 = jax.random.normal(kx, (N2, C2), dtype=jnp.float32).astype(jnp.bfloat16)
    t2 = jax.random.randint(kt, (N2,), 0, C2, dtype=jnp.int32)
    loss2 = jax.block_until_ready(
        label_smoothing_cross_entropy(x2, t2, smoothing=0.1))
    ref2 = _reference(x2.astype(jnp.float32), t2, smoothing=0.1)
    assert loss2.shape == (N2,)
    assert jnp.allclose(loss2, ref2, atol=1e-4, rtol=1e-4), (loss2, ref2)

    print("KERNEL_OK")
</pallas_src>

<mosaic_0001>
module attributes {stable_mosaic.version = 11 : i64} {
  func.func @_ls_ce_kernel(%arg0: i32, %arg1: memref<8x32xf32, #tpu.memory_space<vmem>>, %arg2: memref<8x1xi32, #tpu.memory_space<vmem>>, %arg3: memref<8x1xf32, #tpu.memory_space<vmem>>) attributes {dimension_semantics = [#tpu.dimension_semantics<parallel>], iteration_bounds = array<i64: 2>, scalar_prefetch = 0 : i64, scratch_operands = 0 : i64, tpu.core_type = #tpu.core_type<tc>, window_params = [{transform_indices = @transform_0, window_bounds = array<i64: 8, 32>}, {transform_indices = @transform_1, window_bounds = array<i64: 8, 1>}, {transform_indices = @transform_2, window_bounds = array<i64: 8, 1>}]} {
    %c0 = arith.constant 0 : index
    %c0_0 = arith.constant 0 : index
    %0 = vector.load %arg1[%c0, %c0_0] : memref<8x32xf32, #tpu.memory_space<vmem>>, vector<8x32xf32>
    %cst = arith.constant dense<0xFF800000> : vector<8xf32>
    %1 = vector.multi_reduction <maximumf>, %0, %cst [1] : vector<8x32xf32> to vector<8xf32>
    %2 = vector.shape_cast %1 : vector<8xf32> to vector<8x1xf32>
    %c0_1 = arith.constant 0 : index
    %c0_2 = arith.constant 0 : index
    %3 = vector.load %arg2[%c0_1, %c0_2] : memref<8x1xi32, #tpu.memory_space<vmem>>, vector<8x1xi32>
    %4 = tpu.iota {dimensions = array<i32: 1>} : vector<8x32xi32>
    %5 = vector.broadcast %3 : vector<8x1xi32> to vector<8x32xi32>
    %6 = arith.cmpi eq, %4, %5 : vector<8x32xi32>
    %cst_3 = arith.constant 0.903124988 : f32
    %cst_4 = arith.constant 3.125000e-03 : f32
    %7 = vector.broadcast %cst_3 : f32 to vector<8x32xf32>
    %8 = vector.broadcast %cst_4 : f32 to vector<8x32xf32>
    %9 = arith.select %6, %7, %8 : vector<8x32xi1>, vector<8x32xf32>
    %10 = arith.mulf %9, %0 : vector<8x32xf32>
    %cst_5 = arith.constant dense<0.000000e+00> : vector<8xf32>
    %11 = vector.multi_reduction <add>, %10, %cst_5 [1] : vector<8x32xf32> to vector<8xf32>
    %12 = vector.shape_cast %11 : vector<8xf32> to vector<8x1xf32>
    %13 = vector.broadcast %2 : vector<8x1xf32> to vector<8x32xf32>
    %14 = arith.subf %0, %13 : vector<8x32xf32>
    %15 = math.exp %14 : vector<8x32xf32>
    %cst_6 = arith.constant dense<0.000000e+00> : vector<8xf32>
    %16 = vector.multi_reduction <add>, %15, %cst_6 [1] : vector<8x32xf32> to vector<8xf32>
    %17 = vector.shape_cast %16 : vector<8xf32> to vector<8x1xf32>
    %18 = math.log %17 : vector<8x1xf32>
    %19 = arith.addf %2, %18 : vector<8x1xf32>
    %20 = arith.subf %19, %12 : vector<8x1xf32>
    %c0_7 = arith.constant 0 : index
    %c0_8 = arith.constant 0 : index
    %21 = vector.load %arg3[%c0_7, %c0_8] : memref<8x1xf32, #tpu.memory_space<vmem>>, vector<8x1xf32>
    tpu.vector_store %arg3[%c0_7, %c0_8], %20 {strides = array<i32>} : memref<8x1xf32, #tpu.memory_space<vmem>>, vector<8x1xf32>,
    return
  }
  func.func @transform_0(%arg0: i32) -> (i32, i32) {
    %c0_i32 = arith.constant 0 : i32
    %c0_i32_0 = arith.constant 0 : i32
    return %arg0, %c0_i32 : i32, i32
  }
  func.func @transform_1(%arg0: i32) -> (i32, i32) {
    %c0_i32 = arith.constant 0 : i32
    %c0_i32_0 = arith.constant 0 : i32
    return %arg0, %c0_i32 : i32, i32
  }
  func.func @transform_2(%arg0: i32) -> (i32, i32) {
    %c0_i32 = arith.constant 0 : i32
    %c0_i32_0 = arith.constant 0 : i32
    return %arg0, %c0_i32 : i32, i32
  }
}

</mosaic_0001>

<bundles_post_ra>
// kernel: tpu_custom_call.1
= control target key start
LH: loop header
LB: loop body
LE: loop exit
PB: predicated region body
PF: predicated region fallthrough
CT: control target
= control target key end

     0   :  { %s300_s9 = smov 0   ;;  %s328_s0 = inlined_call_operand.vmem [shape: f32[16,32], index: 0, kind: input, shape index: {}]   ;;  %s329_s1 = inlined_call_operand.vmem [shape: s32[16,1], index: 1, kind: input, shape index: {}]   ;;  %s330_s2 = inlined_call_operand.vmem [shape: f32[16,1], index: 2, kind: output, shape index: {}]  }
   0x1 LB: > { %s250_s10 = sadd.s32 4294967295, %s281_s9   ;;  %p254_p0 = scmp.ge.s32.totalorder %s281_s9, 1  ;;  %s281_s9 = sphi %s300_s9, %s12_s9  }
   0x2   : > { %p120_p1 = scmp.lt.s32.totalorder %s281_s9, 3 }
   0x4   : > { %p121_p2 = pnand %p254_p0, %p120_p1 }
   0x5   : > { %p144_p3 = scmp.lt.s32.totalorder (!%p121_p2), %s250_s10, 1  ;;  %v283_v0 = vmov (!%p121_p2), 0   ;;  %vm157_vm0 = vcmask (!%p121_p2), 261120   ;;  %v162_v6 = vlaneseq (!%p121_p2)  ;;  %v284_v10 = vmov (!%p121_p2), 0.003125  }
   0x6   : > { %124 = sbr.rel (%p121_p2) target bundleno = 336 (0x150), region = 28  ;;  %270 = vset.pattern.permute.xlu0 (!%p121_p2), %v283_v0  ;;  %vm183_vm2 = vcmask (!%p121_p2), 7168  }
   0x7   : > { %v163_v8 = vand.u32 (!%p121_p2), 127, %v162_v6 }
   0xd   : > { %s332_s10 = smov (!%p144_p3, %s250_s10), 1 }
   0xe   : > { %s308_s11 = sshll.u32 %s332_s10, 3 }
   0xf   : > { %s147_s14 = scalar_lea.vmem %s328_s0, %s308_s11  ;;  %s151_s17 = scalar_lea.vmem %s329_s1, %s308_s11 }
  0x10   : > { %v156_v1 = vld [vmem:[%s147_s14] sm:$0xff]  ;;  %s155_s20 = scalar_lea.vmem %s330_s2, %s308_s11 }
  0x11   : > { %v158_v2 = vsel %vm157_vm0, %v156_v1, -inf  ;;  %v161_v3 = vld [vmem:[%s151_s17] sm:$0xff] }
  0x12   : > { %159 = vmax.xlane.f32.xlu0 %v158_v2 }
  0x28   : > { %165 = vperm.xlu0 %270, %v161_v3  }
  0x9f   : > { %v160_v4 = vpop.xlane.xlu0 %159 }
  0xa0   : > { %v173_v5 = vsub.f32 %v156_v1, %v160_v4 }
  0xa2   : > { %v174_v7 = vmul.f32 1.442695, %v173_v5 }
  0xa4   : > { %271 = vpow2.f32 %v174_v7 }
  0xa7   : > { %v166_v9 = vpop.permute.xlu0 %165 }
  0xa8   : > { %vm167_vm1 = vcmp.eq.s32.totalorder %v163_v8, %v166_v9 }
  0xa9   : > { %v168_v11 = vsel %vm167_vm1, 0.903125, %v284_v10 }
  0xaa   : > { %v169_v12 = vmul.f32 %v168_v11, %v156_v1 }
  0xac   : > { %v170_v15 = vsel %vm157_vm0, %v169_v12, 0.0 }
  0xae   : > { %v272_v13 = vpop.eup %271 }
  0xaf   : > { %v176_v14 = vsel %vm157_vm0, %v272_v13, 0.0 }
  0xb0   : > { %177 = vadd.xlane.f32.xlu1 %v176_v14 }
  0xb4   : > { %171 = vadd.xlane.f32.xlu1 %v170_v15 }
 0x13d   : > { %v178_v16 = vpop.xlane.xlu1 %177 }
 0x13e   : > { %273 = vlog2.f32 %v178_v16 }
 0x141   : > { %v172_v19 = vpop.xlane.xlu1 %171 }
 0x148   : > { %v274_v17 = vpop.eup %273 }
 0x149   : > { %v180_v18 = vmul.f32 0.6931472, %v274_v17 }
 0x14b   : > { %v181_v20 = vadd.f32 %v180_v18, %v160_v4 }
 0x14d   : > { %v182_v21 = vsub.f32 %v181_v20, %v172_v19 }
 0x14f   : > { %184 = vst.msk [vmem:[%s155_s20] sm:$0xff] %vm183_vm2, %v182_v21 }
 0x150 PF: > { %s12_s9 = sadd.s32 1, %s281_s9  }
 0x151   : > { %p9_p4 = scmp.ge.s32.totalorder %s12_s9, 4  }
 0x153   :  { %11 = sbr.rel (!%p9_p4) target bundleno = 1 (0x1), region = 61 }

</bundles_post_ra>
